<compile_context>
chip_gen: v6e
topology: v6e:2x2x1
jax: 0.10.0
libtpu: 0.0.40
codegen_flags: <defaults>
</compile_context>

<pallas_src>
import functools
import math

import jax
import jax.numpy as jnp
from jax import lax
from jax.experimental import pallas as pl
from jax.experimental.pallas import tpu as pltpu


_MAX_UNROLLED_FRAMES = 8  # bound trace-time unrolling of the im2col fill loop


# ----------------------------- Pallas kernel --------------------------------

def _encoder_kernel(x_ref, mask_ref, w1_ref, b1_ref, w2_ref, b2_ref, o_ref,
                    col_ref, *, W, n_cond_frames, n_copies):
    """Encode F = g * n_cond_frames frames resident in VMEM (one grid step).

    x_ref   : (F, Cin, H*W)   bf16   frames, NCHW with spatial flattened on lanes
    mask_ref: (9, 1, H*W)     f32    per-tap edge-validity masks (0/1)
    w1_ref  : (HID, 9*Cin)    bf16   3x3 conv weights in im2col layout
    b1_ref  : (HID, 1)        f32
    w2_ref  : (COUT, HID)     bf16   1x1 projection^T, scale_factor folded in
    b2_ref  : (COUT, 1)       f32    scale_factor folded in
    o_ref   : (g, n_copies, T, COUT, H*W)  f32  latents + fused n_copies repeat
    col_ref : (9*Cin, F*H*W)  f32    im2col scratch, lane-batched over frames
    """
    F, Cin, HW = x_ref.shape
    T = n_cond_frames

    # ---- im2col fill: shifted taps via XLU rolls + precomputed edge masks ---
    # Bounded unroll: F <= _MAX_UNROLLED_FRAMES (or == n_cond_frames).
    for f in range(F):
        x_f = x_ref[f].astype(jnp.float32)                # (Cin, HW)
        for kh in range(3):
            for kw in range(3):
                dh, dw = kh - 1, kw - 1
                t = kh * 3 + kw
                s = dh * W + dw                           # flat shift, |s| <= W+1
                if s == 0:
                    p = x_f                               # center tap
                else:
                    # piece[l] = x_f[l + s]  (np.roll convention: shift = -s)
                    p = pltpu.roll(x_f, shift=(-s) % HW, axis=1)
                    p = p * mask_ref[t]                   # zero out-of-image taps
                # Lane offset f*HW is a multiple of HW (lane-aligned blocks).
                col_ref[pl.ds(t * Cin, Cin), pl.ds(f * HW, HW)] = p

    # ---- conv 3x3 as ONE MXU matmul across all frames: K=9*Cin, N=F*HW -----
    col = col_ref[...].astype(jnp.bfloat16)
    h = jnp.dot(w1_ref[...], col, preferred_element_type=jnp.float32)
    h = h + b1_ref[...]
    h = h * jax.nn.sigmoid(h)                             # SiLU in f32 (EUP)

    # ---- 1x1 projection (scale_factor pre-folded), single MXU matmul -------
    out = jnp.dot(w2_ref[...], h.astype(jnp.bfloat16),
                  preferred_element_type=jnp.float32) + b2_ref[...]
    out = out.astype(o_ref.dtype)                         # (COUT, F*HW)

    # ---- scatter frames to (b-group, copy, t, COUT, HW); copies are written
    #      here so the wrapper needs no broadcast/repeat HBM pass ------------
    for f in range(F):
        frame = out[:, f * HW:(f + 1) * HW]               # (COUT, HW), static slice
        for j in range(n_copies):
            o_ref[f // T, j, f % T] = frame


def _pick_groups_per_block(B, T, Cin, COUT, HW, n_copies,
                           vmem_budget_bytes=16 << 20):
    """Pick g = frame-groups per grid step (each step handles g*T frames).

    g must divide B so every output block covers whole 'b' groups (needed for
    the fused n_copies output).  Keep >=2 grid steps when B allows it (both
    v7x TensorCores get work), cap the Python unroll of the im2col fill loop,
    and cap the per-step VMEM footprint so blocks also fit v7x's 64 MiB VMEM.
    """
    best = 1
    for g in range(1, B + 1):
        if B % g:
            continue
        F = g * T
        if F > _MAX_UNROLLED_FRAMES:
            break
        footprint = (
            F * Cin * HW * 2 * 2                        # x blocks, bf16, dbl-buffered
            + g * n_copies * T * COUT * HW * 4 * 2      # out blocks, f32, dbl-buffered
            + 9 * Cin * F * HW * 4                      # im2col scratch, f32
        )
        if footprint > vmem_budget_bytes:
            break
        if B >= 2 and B // g < 2:
            continue                                    # keep >=2 grid steps
        best = g
    return best


def _make_tap_masks(H, W):
    """Per-tap (dh, dw) validity masks, flattened to (9, 1, H*W) f32.

    Precomputed outside the kernel (avoids in-kernel vector %/// for
    non-power-of-two W)."""
    hh = jnp.arange(H, dtype=jnp.int32).reshape(H, 1)
    ww = jnp.arange(W, dtype=jnp.int32).reshape(1, W)
    masks = []
    for kh in range(3):
        for kw in range(3):
            dh, dw = kh - 1, kw - 1
            ok = ((hh + dh >= 0) & (hh + dh <= H - 1) &
                  (ww + dw >= 0) & (ww + dw <= W - 1))
            masks.append(ok.reshape(1, H * W))
    return jnp.stack(masks, axis=0).astype(jnp.float32)   # (9, 1, HW)


def encode_frames_pallas(x, tap_masks, w1k, b1k, w2k, b2k, *, W,
                         n_cond_frames, n_copies, groups_per_block):
    """x: (BT, Cin, H*W) bf16 -> (B, n_copies, T, COUT, H*W) f32 latents."""
    BT, Cin, HW = x.shape
    HID, K = w1k.shape
    COUT = w2k.shape[0]
    T = n_cond_frames
    B = BT // T
    g = groups_per_block
    F = g * T
    grid = (B // g,)

    kernel = functools.partial(_encoder_kernel, W=W,
                               n_cond_frames=T, n_copies=n_copies)

    return pl.pallas_call(
        kernel,
        out_shape=jax.ShapeDtypeStruct((B, n_copies, T, COUT, HW), jnp.float32),
        grid=grid,
        in_specs=[
            pl.BlockSpec((F, Cin, HW), lambda i: (i, 0, 0)),
            pl.BlockSpec((9, 1, HW), lambda i: (0, 0, 0)),
            pl.BlockSpec((HID, K), lambda i: (0, 0)),
            pl.BlockSpec((HID, 1), lambda i: (0, 0)),
            pl.BlockSpec((COUT, HID), lambda i: (0, 0)),
            pl.BlockSpec((COUT, 1), lambda i: (0, 0)),
        ],
        out_specs=pl.BlockSpec((g, n_copies, T, COUT, HW),
                               lambda i: (i, 0, 0, 0, 0)),
        scratch_shapes=[pltpu.VMEM((K, F * HW), jnp.float32)],
        compiler_params=pltpu.CompilerParams(
            dimension_semantics=("parallel",),
            vmem_limit_bytes=48 * 1024 * 1024),
    )(x, tap_masks, w1k, b1k, w2k, b2k)


# --------------------------- module-level forward ----------------------------

def video_prediction_embedder_forward(vid_nchw, params, *, n_cond_frames,
                                      n_copies, scale_factor):
    """Mirrors VideoPredictionEmbedderWithEncoder.forward (sigma path disabled).

    vid_nchw: (B * n_cond_frames, Cin, H, W)   -- PyTorch NCHW convention
    returns : (B * n_copies, n_cond_frames * COUT, H, W)
    """
    w1, b1, w2, b2 = params
    BT, Cin, H, W = vid_nchw.shape
    HID = w1.shape[3]
    COUT = w2.shape[1]
    T = n_cond_frames
    B = BT // T

    # Free, contiguous reshape (spatial flattened onto lanes); bf16 halves the
    # kernel's HBM read of the frames.
    x = vid_nchw.reshape(BT, Cin, H * W).astype(jnp.bfloat16)

    # Tiny weight prep: im2col layout (k = tap*Cin + c), scale_factor folded
    # into the 1x1 projection + bias, bf16 operands for the MXU.
    w1k = jnp.transpose(w1, (3, 0, 1, 2)).reshape(HID, 9 * Cin)
    w1k = w1k.astype(jnp.bfloat16)                              # (HID, 9*Cin)
    b1k = jnp.reshape(b1, (HID, 1)).astype(jnp.float32)
    w2k = jnp.transpose(w2 * scale_factor, (1, 0)).astype(jnp.bfloat16)
    b2k = jnp.reshape(b2 * scale_factor, (COUT, 1)).astype(jnp.float32)

    tap_masks = _make_tap_masks(H, W)                           # (9, 1, HW)

    g = _pick_groups_per_block(B, T, Cin, COUT, H * W, n_copies)
    lat = encode_frames_pallas(x, tap_masks, w1k, b1k, w2k, b2k, W=W,
                               n_cond_frames=T, n_copies=n_copies,
                               groups_per_block=g)
    # (B, n_copies, T, COUT, HW) -> (B*n_copies, T*COUT, H, W): both
    # rearrange '(b t) c h w -> b 1 (t c) h w' and the n_copies repeat are
    # already realized in the kernel output layout, so this is a free view.
    return lat.reshape(B * n_copies, T * COUT, H, W)


# ------------------------------ reference (JAX) -------------------------------

def _encoder_ref(x_nhwc, w1, b1, w2, b2, scale_factor):
    y = lax.conv_general_dilated(
        x_nhwc, w1, window_strides=(1, 1), padding="SAME",
        dimension_numbers=("NHWC", "HWIO", "NHWC"),
        precision=lax.Precision.HIGHEST)
    y = y + b1[0]
    y = y * jax.nn.sigmoid(y)
    y = jnp.einsum("bhwc,cd->bhwd", y, w2,
                   precision=lax.Precision.HIGHEST) + b2[0]
    return y * scale_factor


def _forward_ref(vid_nchw, params, *, n_cond_frames, n_copies, scale_factor):
    w1, b1, w2, b2 = params
    x = jnp.transpose(vid_nchw, (0, 2, 3, 1))
    lat = _encoder_ref(x, w1, b1, w2, b2, scale_factor)
    lat = jnp.transpose(lat, (0, 3, 1, 2))
    BT, COUT, H, W = lat.shape
    B = BT // n_cond_frames
    lat = lat.reshape(B, 1, n_cond_frames * COUT, H, W)
    out = jnp.broadcast_to(lat, (B, n_copies, n_cond_frames * COUT, H, W))
    return out.reshape(B * n_copies, n_cond_frames * COUT, H, W)


# ----------------------------------- main -------------------------------------

if __name__ == "__main__":
    # Small, module-consistent shapes.
    B = 2                 # "bs" before frame expansion
    N_COND_FRAMES = 2
    N_COPIES = 2
    CIN = 4               # input channels
    H = W = 16
    HID = 32              # encoder hidden width
    COUT = 8              # latent channels
    SCALE_FACTOR = 0.18215

    key = jax.random.PRNGKey(0)
    k_vid, k_w1, k_b1, k_w2, k_b2 = jax.random.split(key, 5)

    # vid arrives as (b * n_cond_frames, c, h, w) per the module's contract.
    vid = jax.random.normal(k_vid, (B * N_COND_FRAMES, CIN, H, W), jnp.float32)

    # Deterministic synthetic encoder parameters.
    w1 = jax.random.normal(k_w1, (3, 3, CIN, HID), jnp.float32) * (
        1.0 / math.sqrt(9 * CIN))
    b1 = jax.random.normal(k_b1, (1, HID), jnp.float32) * 0.01
    w2 = jax.random.normal(k_w2, (HID, COUT), jnp.float32) * (
        1.0 / math.sqrt(HID))
    b2 = jax.random.normal(k_b2, (1, COUT), jnp.float32) * 0.01
    params = (w1, b1, w2, b2)

    fwd = jax.jit(functools.partial(
        video_prediction_embedder_forward,
        n_cond_frames=N_COND_FRAMES, n_copies=N_COPIES,
        scale_factor=SCALE_FACTOR))

    out = fwd(vid, params)
    out = jax.block_until_ready(out)

    expected_shape = (B * N_COPIES, N_COND_FRAMES * COUT, H, W)
    assert out.shape == expected_shape, (out.shape, expected_shape)

    ref = _forward_ref(vid, params, n_cond_frames=N_COND_FRAMES,
                       n_copies=N_COPIES, scale_factor=SCALE_FACTOR)
    ref = jax.block_until_ready(ref)
    # bf16 matmul operands (f32 accumulation) => slightly looser tolerance.
    assert jnp.allclose(out, ref, atol=2e-2, rtol=2e-2), float(
        jnp.max(jnp.abs(out - ref)))

    print("KERNEL_OK")
</pallas_src>

<mosaic_0001>
module attributes {stable_mosaic.version = 11 : i64} {
  func.func @_encoder_kernel(%arg0: i32, %arg1: memref<2x4x256xbf16, #tpu.memory_space<vmem>>, %arg2: memref<9x1x256xf32, #tpu.memory_space<vmem>>, %arg3: memref<32x36xbf16, #tpu.memory_space<vmem>>, %arg4: memref<32x1xf32, #tpu.memory_space<vmem>>, %arg5: memref<8x32xbf16, #tpu.memory_space<vmem>>, %arg6: memref<8x1xf32, #tpu.memory_space<vmem>>, %arg7: memref<1x2x2x8x256xf32, #tpu.memory_space<vmem>>, %arg8: memref<36x512xf32, #tpu.memory_space<vmem>>) attributes {dimension_semantics = [#tpu.dimension_semantics<parallel>], iteration_bounds = array<i64: 2>, scalar_prefetch = 0 : i64, scratch_operands = 1 : i64, tpu.core_type = #tpu.core_type<tc>, window_params = [{transform_indices = @transform_0, window_bounds = array<i64: 2, 4, 256>}, {pipeline_mode = #tpu.pipeline_mode<synchronous>, transform_indices = @transform_1, window_bounds = array<i64: 9, 1, 256>}, {pipeline_mode = #tpu.pipeline_mode<synchronous>, transform_indices = @transform_2, window_bounds = array<i64: 32, 36>}, {pipeline_mode = #tpu.pipeline_mode<synchronous>, transform_indices = @transform_3, window_bounds = array<i64: 32, 1>}, {pipeline_mode = #tpu.pipeline_mode<synchronous>, transform_indices = @transform_4, window_bounds = array<i64: 8, 32>}, {pipeline_mode = #tpu.pipeline_mode<synchronous>, transform_indices = @transform_5, window_bounds = array<i64: 8, 1>}, {transform_indices = @transform_6, window_bounds = array<i64: 1, 2, 2, 8, 256>}]} {
    %c0 = arith.constant 0 : index
    %c0_0 = arith.constant 0 : index
    %c0_1 = arith.constant 0 : index
    %0 = vector.load %arg1[%c0, %c0_0, %c0_1] : memref<2x4x256xbf16, #tpu.memory_space<vmem>>, vector<1x4x256xbf16>
    %1 = vector.shape_cast %0 : vector<1x4x256xbf16> to vector<4x256xbf16>
    %2 = arith.extf %1 : vector<4x256xbf16> to vector<4x256xf32>
    %c17_i32 = arith.constant 17 : i32
    %3 = tpu.dynamic_rotate %2 by %c17_i32 dim 1 : vector<4x256xf32>, i32 -> vector<4x256xf32>
    %c0_2 = arith.constant 0 : index
    %c0_3 = arith.constant 0 : index
    %c0_4 = arith.constant 0 : index
    %4 = vector.load %arg2[%c0_2, %c0_3, %c0_4] : memref<9x1x256xf32, #tpu.memory_space<vmem>>, vector<1x1x256xf32>
    %5 = vector.shape_cast %4 : vector<1x1x256xf32> to vector<1x256xf32>
    %6 = vector.broadcast %5 : vector<1x256xf32> to vector<4x256xf32>
    %7 = arith.mulf %3, %6 : vector<4x256xf32>
    %c0_5 = arith.constant 0 : index
    %c0_6 = arith.constant 0 : index
    %8 = vector.load %arg8[%c0_5, %c0_6] : memref<36x512xf32, #tpu.memory_space<vmem>>, vector<4x256xf32>
    tpu.vector_store %arg8[%c0_5, %c0_6], %7 {strides = array<i32>} : memref<36x512xf32, #tpu.memory_space<vmem>>, vector<4x256xf32>,
    %c16_i32 = arith.constant 16 : i32
    %9 = tpu.dynamic_rotate %2 by %c16_i32 dim 1 : vector<4x256xf32>, i32 -> vector<4x256xf32>
    %c1 = arith.constant 1 : index
    %c0_7 = arith.constant 0 : index
    %c0_8 = arith.constant 0 : index
    %10 = vector.load %arg2[%c1, %c0_7, %c0_8] : memref<9x1x256xf32, #tpu.memory_space<vmem>>, vector<1x1x256xf32>
    %11 = vector.shape_cast %10 : vector<1x1x256xf32> to vector<1x256xf32>
    %12 = vector.broadcast %11 : vector<1x256xf32> to vector<4x256xf32>
    %13 = arith.mulf %9, %12 : vector<4x256xf32>
    %c4 = arith.constant 4 : index
    %c0_9 = arith.constant 0 : index
    %14 = vector.load %arg8[%c4, %c0_9] : memref<36x512xf32, #tpu.memory_space<vmem>>, vector<4x256xf32>
    tpu.vector_store %arg8[%c4, %c0_9], %13 {strides = array<i32>} : memref<36x512xf32, #tpu.memory_space<vmem>>, vector<4x256xf32>,
    %c15_i32 = arith.constant 15 : i32
    %15 = tpu.dynamic_rotate %2 by %c15_i32 dim 1 : vector<4x256xf32>, i32 -> vector<4x256xf32>
    %c2 = arith.constant 2 : index
    %c0_10 = arith.constant 0 : index
    %c0_11 = arith.constant 0 : index
    %16 = vector.load %arg2[%c2, %c0_10, %c0_11] : memref<9x1x256xf32, #tpu.memory_space<vmem>>, vector<1x1x256xf32>
    %17 = vector.shape_cast %16 : vector<1x1x256xf32> to vector<1x256xf32>
    %18 = vector.broadcast %17 : vector<1x256xf32> to vector<4x256xf32>
    %19 = arith.mulf %15, %18 : vector<4x256xf32>
    %c8 = arith.constant 8 : index
    %c0_12 = arith.constant 0 : index
    %20 = vector.load %arg8[%c8, %c0_12] : memref<36x512xf32, #tpu.memory_space<vmem>>, vector<4x256xf32>
    tpu.vector_store %arg8[%c8, %c0_12], %19 {strides = array<i32>} : memref<36x512xf32, #tpu.memory_space<vmem>>, vector<4x256xf32>,
    %c1_i32 = arith.constant 1 : i32
    %21 = tpu.dynamic_rotate %2 by %c1_i32 dim 1 : vector<4x256xf32>, i32 -> vector<4x256xf32>
    %c3 = arith.constant 3 : index
    %c0_13 = arith.constant 0 : index
    %c0_14 = arith.constant 0 : index
    %22 = vector.load %arg2[%c3, %c0_13, %c0_14] : memref<9x1x256xf32, #tpu.memory_space<vmem>>, vector<1x1x256xf32>
    %23 = vector.shape_cast %22 : vector<1x1x256xf32> to vector<1x256xf32>
    %24 = vector.broadcast %23 : vector<1x256xf32> to vector<4x256xf32>
    %25 = arith.mulf %21, %24 : vector<4x256xf32>
    %c12 = arith.constant 12 : index
    %c0_15 = arith.constant 0 : index
    %26 = vector.load %arg8[%c12, %c0_15] : memref<36x512xf32, #tpu.memory_space<vmem>>, vector<4x256xf32>
    tpu.vector_store %arg8[%c12, %c0_15], %25 {strides = array<i32>} : memref<36x512xf32, #tpu.memory_space<vmem>>, vector<4x256xf32>,
    %c16 = arith.constant 16 : index
    %c0_16 = arith.constant 0 : index
    %27 = vector.load %arg8[%c16, %c0_16] : memref<36x512xf32, #tpu.memory_space<vmem>>, vector<4x256xf32>
    tpu.vector_store %arg8[%c16, %c0_16], %2 {strides = array<i32>} : memref<36x512xf32, #tpu.memory_space<vmem>>, vector<4x256xf32>,
    %c255_i32 = arith.constant 255 : i32
    %28 = tpu.dynamic_rotate %2 by %c255_i32 dim 1 : vector<4x256xf32>, i32 -> vector<4x256xf32>
    %c5 = arith.constant 5 : index
    %c0_17 = arith.constant 0 : index
    %c0_18 = arith.constant 0 : index
    %29 = vector.load %arg2[%c5, %c0_17, %c0_18] : memref<9x1x256xf32, #tpu.memory_space<vmem>>, vector<1x1x256xf32>
    %30 = vector.shape_cast %29 : vector<1x1x256xf32> to vector<1x256xf32>
    %31 = vector.broadcast %30 : vector<1x256xf32> to vector<4x256xf32>
    %32 = arith.mulf %28, %31 : vector<4x256xf32>
    %c20 = arith.constant 20 : index
    %c0_19 = arith.constant 0 : index
    %33 = vector.load %arg8[%c20, %c0_19] : memref<36x512xf32, #tpu.memory_space<vmem>>, vector<4x256xf32>
    tpu.vector_store %arg8[%c20, %c0_19], %32 {strides = array<i32>} : memref<36x512xf32, #tpu.memory_space<vmem>>, vector<4x256xf32>,
    %c241_i32 = arith.constant 241 : i32
    %34 = tpu.dynamic_rotate %2 by %c241_i32 dim 1 : vector<4x256xf32>, i32 -> vector<4x256xf32>
    %c6 = arith.constant 6 : index
    %c0_20 = arith.constant 0 : index
    %c0_21 = arith.constant 0 : index
    %35 = vector.load %arg2[%c6, %c0_20, %c0_21] : memref<9x1x256xf32, #tpu.memory_space<vmem>>, vector<1x1x256xf32>
    %36 = vector.shape_cast %35 : vector<1x1x256xf32> to vector<1x256xf32>
    %37 = vector.broadcast %36 : vector<1x256xf32> to vector<4x256xf32>
    %38 = arith.mulf %34, %37 : vector<4x256xf32>
    %c24 = arith.constant 24 : index
    %c0_22 = arith.constant 0 : index
    %39 = vector.load %arg8[%c24, %c0_22] : memref<36x512xf32, #tpu.memory_space<vmem>>, vector<4x256xf32>
    tpu.vector_store %arg8[%c24, %c0_22], %38 {strides = array<i32>} : memref<36x512xf32, #tpu.memory_space<vmem>>, vector<4x256xf32>,
    %c240_i32 = arith.constant 240 : i32
    %40 = tpu.dynamic_rotate %2 by %c240_i32 dim 1 : vector<4x256xf32>, i32 -> vector<4x256xf32>
    %c7 = arith.constant 7 : index
    %c0_23 = arith.constant 0 : index
    %c0_24 = arith.constant 0 : index
    %41 = vector.load %arg2[%c7, %c0_23, %c0_24] : memref<9x1x256xf32, #tpu.memory_space<vmem>>, vector<1x1x256xf32>
    %42 = vector.shape_cast %41 : vector<1x1x256xf32> to vector<1x256xf32>
    %43 = vector.broadcast %42 : vector<1x256xf32> to vector<4x256xf32>
    %44 = arith.mulf %40, %43 : vector<4x256xf32>
    %c28 = arith.constant 28 : index
    %c0_25 = arith.constant 0 : index
    %45 = vector.load %arg8[%c28, %c0_25] : memref<36x512xf32, #tpu.memory_space<vmem>>, vector<4x256xf32>
    tpu.vector_store %arg8[%c28, %c0_25], %44 {strides = array<i32>} : memref<36x512xf32, #tpu.memory_space<vmem>>, vector<4x256xf32>,
    %c239_i32 = arith.constant 239 : i32
    %46 = tpu.dynamic_rotate %2 by %c239_i32 dim 1 : vector<4x256xf32>, i32 -> vector<4x256xf32>
    %c8_26 = arith.constant 8 : index
    %c0_27 = arith.constant 0 : index
    %c0_28 = arith.constant 0 : index
    %47 = vector.load %arg2[%c8_26, %c0_27, %c0_28] : memref<9x1x256xf32, #tpu.memory_space<vmem>>, vector<1x1x256xf32>
    %48 = vector.shape_cast %47 : vector<1x1x256xf32> to vector<1x256xf32>
    %49 = vector.broadcast %48 : vector<1x256xf32> to vector<4x256xf32>
    %50 = arith.mulf %46, %49 : vector<4x256xf32>
    %c32 = arith.constant 32 : index
    %c0_29 = arith.constant 0 : index
    %51 = vector.load %arg8[%c32, %c0_29] : memref<36x512xf32, #tpu.memory_space<vmem>>, vector<4x256xf32>
    tpu.vector_store %arg8[%c32, %c0_29], %50 {strides = array<i32>} : memref<36x512xf32, #tpu.memory_space<vmem>>, vector<4x256xf32>,
    %c1_30 = arith.constant 1 : index
    %c0_31 = arith.constant 0 : index
    %c0_32 = arith.constant 0 : index
    %52 = vector.load %arg1[%c1_30, %c0_31, %c0_32] : memref<2x4x256xbf16, #tpu.memory_space<vmem>>, vector<1x4x256xbf16>
    %53 = vector.shape_cast %52 : vector<1x4x256xbf16> to vector<4x256xbf16>
    %54 = arith.extf %53 : vector<4x256xbf16> to vector<4x256xf32>
    %c17_i32_33 = arith.constant 17 : i32
    %55 = tpu.dynamic_rotate %54 by %c17_i32_33 dim 1 : vector<4x256xf32>, i32 -> vector<4x256xf32>
    %c0_34 = arith.constant 0 : index
    %c0_35 = arith.constant 0 : index
    %c0_36 = arith.constant 0 : index
    %56 = vector.load %arg2[%c0_34, %c0_35, %c0_36] : memref<9x1x256xf32, #tpu.memory_space<vmem>>, vector<1x1x256xf32>
    %57 = vector.shape_cast %56 : vector<1x1x256xf32> to vector<1x256xf32>
    %58 = vector.broadcast %57 : vector<1x256xf32> to vector<4x256xf32>
    %59 = arith.mulf %55, %58 : vector<4x256xf32>
    %c0_37 = arith.constant 0 : index
    %c256 = arith.constant 256 : index
    %60 = vector.load %arg8[%c0_37, %c256] : memref<36x512xf32, #tpu.memory_space<vmem>>, vector<4x256xf32>
    tpu.vector_store %arg8[%c0_37, %c256], %59 {strides = array<i32>} : memref<36x512xf32, #tpu.memory_space<vmem>>, vector<4x256xf32>,
    %c16_i32_38 = arith.constant 16 : i32
    %61 = tpu.dynamic_rotate %54 by %c16_i32_38 dim 1 : vector<4x256xf32>, i32 -> vector<4x256xf32>
    %c1_39 = arith.constant 1 : index
    %c0_40 = arith.constant 0 : index
    %c0_41 = arith.constant 0 : index
    %62 = vector.load %arg2[%c1_39, %c0_40, %c0_41] : memref<9x1x256xf32, #tpu.memory_space<vmem>>, vector<1x1x256xf32>
    %63 = vector.shape_cast %62 : vector<1x1x256xf32> to vector<1x256xf32>
    %64 = vector.broadcast %63 : vector<1x256xf32> to vector<4x256xf32>
    %65 = arith.mulf %61, %64 : vector<4x256xf32>
    %c4_42 = arith.constant 4 : index
    %c256_43 = arith.constant 256 : index
    %66 = vector.load %arg8[%c4_42, %c256_43] : memref<36x512xf32, #tpu.memory_space<vmem>>, vector<4x256xf32>
    tpu.vector_store %arg8[%c4_42, %c256_43], %65 {strides = array<i32>} : memref<36x512xf32, #tpu.memory_space<vmem>>, vector<4x256xf32>,
    %c15_i32_44 = arith.constant 15 : i32
    %67 = tpu.dynamic_rotate %54 by %c15_i32_44 dim 1 : vector<4x256xf32>, i32 -> vector<4x256xf32>
    %c2_45 = arith.constant 2 : index
    %c0_46 = arith.constant 0 : index
    %c0_47 = arith.constant 0 : index
    %68 = vector.load %arg2[%c2_45, %c0_46, %c0_47] : memref<9x1x256xf32, #tpu.memory_space<vmem>>, vector<1x1x256xf32>
    %69 = vector.shape_cast %68 : vector<1x1x256xf32> to vector<1x256xf32>
    %70 = vector.broadcast %69 : vector<1x256xf32> to vector<4x256xf32>
    %71 = arith.mulf %67, %70 : vector<4x256xf32>
    %c8_48 = arith.constant 8 : index
    %c256_49 = arith.constant 256 : index
    %72 = vector.load %arg8[%c8_48, %c256_49] : memref<36x512xf32, #tpu.memory_space<vmem>>, vector<4x256xf32>
    tpu.vector_store %arg8[%c8_48, %c256_49], %71 {strides = array<i32>} : memref<36x512xf32, #tpu.memory_space<vmem>>, vector<4x256xf32>,
    %c1_i32_50 = arith.constant 1 : i32
    %73 = tpu.dynamic_rotate %54 by %c1_i32_50 dim 1 : vector<4x256xf32>, i32 -> vector<4x256xf32>
    %c3_51 = arith.constant 3 : index
    %c0_52 = arith.constant 0 : index
    %c0_53 = arith.constant 0 : index
    %74 = vector.load %arg2[%c3_51, %c0_52, %c0_53] : memref<9x1x256xf32, #tpu.memory_space<vmem>>, vector<1x1x256xf32>
    %75 = vector.shape_cast %74 : vector<1x1x256xf32> to vector<1x256xf32>
    %76 = vector.broadcast %75 : vector<1x256xf32> to vector<4x256xf32>
    %77 = arith.mulf %73, %76 : vector<4x256xf32>
    %c12_54 = arith.constant 12 : index
    %c256_55 = arith.constant 256 : index
    %78 = vector.load %arg8[%c12_54, %c256_55] : memref<36x512xf32, #tpu.memory_space<vmem>>, vector<4x256xf32>
    tpu.vector_store %arg8[%c12_54, %c256_55], %77 {strides = array<i32>} : memref<36x512xf32, #tpu.memory_space<vmem>>, vector<4x256xf32>,
    %c16_56 = arith.constant 16 : index
    %c256_57 = arith.constant 256 : index
    %79 = vector.load %arg8[%c16_56, %c256_57] : memref<36x512xf32, #tpu.memory_space<vmem>>, vector<4x256xf32>
    tpu.vector_store %arg8[%c16_56, %c256_57], %54 {strides = array<i32>} : memref<36x512xf32, #tpu.memory_space<vmem>>, vector<4x256xf32>,
    %c255_i32_58 = arith.constant 255 : i32
    %80 = tpu.dynamic_rotate %54 by %c255_i32_58 dim 1 : vector<4x256xf32>, i32 -> vector<4x256xf32>
    %c5_59 = arith.constant 5 : index
    %c0_60 = arith.constant 0 : index
    %c0_61 = arith.constant 0 : index
    %81 = vector.load %arg2[%c5_59, %c0_60, %c0_61] : memref<9x1x256xf32, #tpu.memory_space<vmem>>, vector<1x1x256xf32>
    %82 = vector.shape_cast %81 : vector<1x1x256xf32> to vector<1x256xf32>
    %83 = vector.broadcast %82 : vector<1x256xf32> to vector<4x256xf32>
    %84 = arith.mulf %80, %83 : vector<4x256xf32>
    %c20_62 = arith.constant 20 : index
    %c256_63 = arith.constant 256 : index
    %85 = vector.load %arg8[%c20_62, %c256_63] : memref<36x512xf32, #tpu.memory_space<vmem>>, vector<4x256xf32>
    tpu.vector_store %arg8[%c20_62, %c256_63], %84 {strides = array<i32>} : memref<36x512xf32, #tpu.memory_space<vmem>>, vector<4x256xf32>,
    %c241_i32_64 = arith.constant 241 : i32
    %86 = tpu.dynamic_rotate %54 by %c241_i32_64 dim 1 : vector<4x256xf32>, i32 -> vector<4x256xf32>
    %c6_65 = arith.constant 6 : index
    %c0_66 = arith.constant 0 : index
    %c0_67 = arith.constant 0 : index
    %87 = vector.load %arg2[%c6_65, %c0_66, %c0_67] : memref<9x1x256xf32, #tpu.memory_space<vmem>>, vector<1x1x256xf32>
    %88 = vector.shape_cast %87 : vector<1x1x256xf32> to vector<1x256xf32>
    %89 = vector.broadcast %88 : vector<1x256xf32> to vector<4x256xf32>
    %90 = arith.mulf %86, %89 : vector<4x256xf32>
    %c24_68 = arith.constant 24 : index
    %c256_69 = arith.constant 256 : index
    %91 = vector.load %arg8[%c24_68, %c256_69] : memref<36x512xf32, #tpu.memory_space<vmem>>, vector<4x256xf32>
    tpu.vector_store %arg8[%c24_68, %c256_69], %90 {strides = array<i32>} : memref<36x512xf32, #tpu.memory_space<vmem>>, vector<4x256xf32>,
    %c240_i32_70 = arith.constant 240 : i32
    %92 = tpu.dynamic_rotate %54 by %c240_i32_70 dim 1 : vector<4x256xf32>, i32 -> vector<4x256xf32>
    %c7_71 = arith.constant 7 : index
    %c0_72 = arith.constant 0 : index
    %c0_73 = arith.constant 0 : index
    %93 = vector.load %arg2[%c7_71, %c0_72, %c0_73] : memref<9x1x256xf32, #tpu.memory_space<vmem>>, vector<1x1x256xf32>
    %94 = vector.shape_cast %93 : vector<1x1x256xf32> to vector<1x256xf32>
    %95 = vector.broadcast %94 : vector<1x256xf32> to vector<4x256xf32>
    %96 = arith.mulf %92, %95 : vector<4x256xf32>
    %c28_74 = arith.constant 28 : index
    %c256_75 = arith.constant 256 : index
    %97 = vector.load %arg8[%c28_74, %c256_75] : memref<36x512xf32, #tpu.memory_space<vmem>>, vector<4x256xf32>
    tpu.vector_store %arg8[%c28_74, %c256_75], %96 {strides = array<i32>} : memref<36x512xf32, #tpu.memory_space<vmem>>, vector<4x256xf32>,
    %c239_i32_76 = arith.constant 239 : i32
    %98 = tpu.dynamic_rotate %54 by %c239_i32_76 dim 1 : vector<4x256xf32>, i32 -> vector<4x256xf32>
    %c8_77 = arith.constant 8 : index
    %c0_78 = arith.constant 0 : index
    %c0_79 = arith.constant 0 : index
    %99 = vector.load %arg2[%c8_77, %c0_78, %c0_79] : memref<9x1x256xf32, #tpu.memory_space<vmem>>, vector<1x1x256xf32>
    %100 = vector.shape_cast %99 : vector<1x1x256xf32> to vector<1x256xf32>
    %101 = vector.broadcast %100 : vector<1x256xf32> to vector<4x256xf32>
    %102 = arith.mulf %98, %101 : vector<4x256xf32>
    %c32_80 = arith.constant 32 : index
    %c256_81 = arith.constant 256 : index
    %103 = vector.load %arg8[%c32_80, %c256_81] : memref<36x512xf32, #tpu.memory_space<vmem>>, vector<4x256xf32>
    tpu.vector_store %arg8[%c32_80, %c256_81], %102 {strides = array<i32>} : memref<36x512xf32, #tpu.memory_space<vmem>>, vector<4x256xf32>,
    %c0_82 = arith.constant 0 : index
    %c0_83 = arith.constant 0 : index
    %104 = vector.load %arg8[%c0_82, %c0_83] : memref<36x512xf32, #tpu.memory_space<vmem>>, vector<36x512xf32>
    %105 = arith.truncf %104 : vector<36x512xf32> to vector<36x512xbf16>
    %c0_84 = arith.constant 0 : index
    %c0_85 = arith.constant 0 : index
    %106 = vector.load %arg3[%c0_84, %c0_85] : memref<32x36xbf16, #tpu.memory_space<vmem>>, vector<32x36xbf16>
    %cst = arith.constant dense<0.000000e+00> : vector<32x512xf32>
    %107 = tpu.matmul %106, %105, %cst {dimension_numbers = #tpu.dot_dimension_numbers<[1], [0], [0], [1], [0, 0, 1, 1], [], []>} : vector<32x36xbf16>, vector<36x512xbf16>, vector<32x512xf32> -> vector<32x512xf32>
    %c0_86 = arith.constant 0 : index
    %c0_87 = arith.constant 0 : index
    %108 = vector.load %arg4[%c0_86, %c0_87] : memref<32x1xf32, #tpu.memory_space<vmem>>, vector<32x1xf32>
    %109 = vector.broadcast %108 : vector<32x1xf32> to vector<32x512xf32>
    %110 = arith.addf %107, %109 : vector<32x512xf32>
    %111 = arith.negf %110 : vector<32x512xf32>
    %112 = math.exp %111 : vector<32x512xf32>
    %cst_88 = arith.constant 1.000000e+00 : f32
    %113 = vector.broadcast %cst_88 : f32 to vector<32x512xf32>
    %114 = arith.addf %113, %112 : vector<32x512xf32>
    %115 = arith.divf %113, %114 : vector<32x512xf32>
    %116 = arith.mulf %110, %115 : vector<32x512xf32>
    %c0_89 = arith.constant 0 : index
    %c0_90 = arith.constant 0 : index
    %117 = vector.load %arg5[%c0_89, %c0_90] : memref<8x32xbf16, #tpu.memory_space<vmem>>, vector<8x32xbf16>
    %118 = arith.truncf %116 : vector<32x512xf32> to vector<32x512xbf16>
    %cst_91 = arith.constant dense<0.000000e+00> : vector<8x512xf32>
    %119 = tpu.matmul %117, %118, %cst_91 {dimension_numbers = #tpu.dot_dimension_numbers<[1], [0], [0], [1], [0, 0, 1, 1], [], []>} : vector<8x32xbf16>, vector<32x512xbf16>, vector<8x512xf32> -> vector<8x512xf32>
    %c0_92 = arith.constant 0 : index
    %c0_93 = arith.constant 0 : index
    %120 = vector.load %arg6[%c0_92, %c0_93] : memref<8x1xf32, #tpu.memory_space<vmem>>, vector<8x1xf32>
    %121 = vector.broadcast %120 : vector<8x1xf32> to vector<8x512xf32>
    %122 = arith.addf %119, %121 : vector<8x512xf32>
    %123 = vector.extract_strided_slice %122 {offsets = [0, 0], sizes = [8, 256], strides = [1, 1]} : vector<8x512xf32> to vector<8x256xf32>
    %c0_94 = arith.constant 0 : index
    %c0_95 = arith.constant 0 : index
    %c0_96 = arith.constant 0 : index
    %c0_97 = arith.constant 0 : index
    %c0_98 = arith.constant 0 : index
    %124 = vector.load %arg7[%c0_94, %c0_95, %c0_96, %c0_97, %c0_98] : memref<1x2x2x8x256xf32, #tpu.memory_space<vmem>>, vector<1x1x1x8x256xf32>
    %125 = vector.shape_cast %124 : vector<1x1x1x8x256xf32> to vector<8x256xf32>
    %126 = vector.shape_cast %123 : vector<8x256xf32> to vector<1x1x1x8x256xf32>
    tpu.vector_store %arg7[%c0_94, %c0_95, %c0_96, %c0_97, %c0_98], %126 {strides = array<i32>} : memref<1x2x2x8x256xf32, #tpu.memory_space<vmem>>, vector<1x1x1x8x256xf32>,
    %c0_99 = arith.constant 0 : index
    %c1_100 = arith.constant 1 : index
    %c0_101 = arith.constant 0 : index
    %c0_102 = arith.constant 0 : index
    %c0_103 = arith.constant 0 : index
    %127 = vector.load %arg7[%c0_99, %c1_100, %c0_101, %c0_102, %c0_103] : memref<1x2x2x8x256xf32, #tpu.memory_space<vmem>>, vector<1x1x1x8x256xf32>
    %128 = vector.shape_cast %127 : vector<1x1x1x8x256xf32> to vector<8x256xf32>
    %129 = vector.shape_cast %123 : vector<8x256xf32> to vector<1x1x1x8x256xf32>
    tpu.vector_store %arg7[%c0_99, %c1_100, %c0_101, %c0_102, %c0_103], %129 {strides = array<i32>} : memref<1x2x2x8x256xf32, #tpu.memory_space<vmem>>, vector<1x1x1x8x256xf32>,
    %130 = vector.extract_strided_slice %122 {offsets = [0, 256], sizes = [8, 256], strides = [1, 1]} : vector<8x512xf32> to vector<8x256xf32>
    %c0_104 = arith.constant 0 : index
    %c0_105 = arith.constant 0 : index
    %c1_106 = arith.constant 1 : index
    %c0_107 = arith.constant 0 : index
    %c0_108 = arith.constant 0 : index
    %131 = vector.load %arg7[%c0_104, %c0_105, %c1_106, %c0_107, %c0_108] : memref<1x2x2x8x256xf32, #tpu.memory_space<vmem>>, vector<1x1x1x8x256xf32>
    %132 = vector.shape_cast %131 : vector<1x1x1x8x256xf32> to vector<8x256xf32>
    %133 = vector.shape_cast %130 : vector<8x256xf32> to vector<1x1x1x8x256xf32>
    tpu.vector_store %arg7[%c0_104, %c0_105, %c1_106, %c0_107, %c0_108], %133 {strides = array<i32>} : memref<1x2x2x8x256xf32, #tpu.memory_space<vmem>>, vector<1x1x1x8x256xf32>,
    %c0_109 = arith.constant 0 : index
    %c1_110 = arith.constant 1 : index
    %c1_111 = arith.constant 1 : index
    %c0_112 = arith.constant 0 : index
    %c0_113 = arith.constant 0 : index
    %134 = vector.load %arg7[%c0_109, %c1_110, %c1_111, %c0_112, %c0_113] : memref<1x2x2x8x256xf32, #tpu.memory_space<vmem>>, vector<1x1x1x8x256xf32>
    %135 = vector.shape_cast %134 : vector<1x1x1x8x256xf32> to vector<8x256xf32>
    %136 = vector.shape_cast %130 : vector<8x256xf32> to vector<1x1x1x8x256xf32>
    tpu.vector_store %arg7[%c0_109, %c1_110, %c1_111, %c0_112, %c0_113], %136 {strides = array<i32>} : memref<1x2x2x8x256xf32, #tpu.memory_space<vmem>>, vector<1x1x1x8x256xf32>,
    return
  }
  func.func @transform_0(%arg0: i32) -> (i32, i32, i32) {
    %c0_i32 = arith.constant 0 : i32
    %c0_i32_0 = arith.constant 0 : i32
    %c0_i32_1 = arith.constant 0 : i32
    return %arg0, %c0_i32, %c0_i32_0 : i32, i32, i32
  }
  func.func @transform_1(%arg0: i32) -> (i32, i32, i32) {
    %c0_i32 = arith.constant 0 : i32
    %c0_i32_0 = arith.constant 0 : i32
    %c0_i32_1 = arith.constant 0 : i32
    %c0_i32_2 = arith.constant 0 : i32
    return %c0_i32, %c0_i32_0, %c0_i32_1 : i32, i32, i32
  }
  func.func @transform_2(%arg0: i32) -> (i32, i32) {
    %c0_i32 = arith.constant 0 : i32
    %c0_i32_0 = arith.constant 0 : i32
    %c0_i32_1 = arith.constant 0 : i32
    return %c0_i32, %c0_i32_0 : i32, i32
  }
  func.func @transform_3(%arg0: i32) -> (i32, i32) {
    %c0_i32 = arith.constant 0 : i32
    %c0_i32_0 = arith.constant 0 : i32
    %c0_i32_1 = arith.constant 0 : i32
    return %c0_i32, %c0_i32_0 : i32, i32
  }
  func.func @transform_4(%arg0: i32) -> (i32, i32) {
    %c0_i32 = arith.constant 0 : i32
    %c0_i32_0 = arith.constant 0 : i32
    %c0_i32_1 = arith.constant 0 : i32
    return %c0_i32, %c0_i32_0 : i32, i32
  }
  func.func @transform_5(%arg0: i32) -> (i32, i32) {
    %c0_i32 = arith.constant 0 : i32
    %c0_i32_0 = arith.constant 0 : i32
    %c0_i32_1 = arith.constant 0 : i32
    return %c0_i32, %c0_i32_0 : i32, i32
  }
  func.func @transform_6(%arg0: i32) -> (i32, i32, i32, i32, i32) {
    %c0_i32 = arith.constant 0 : i32
    %c0_i32_0 = arith.constant 0 : i32
    %c0_i32_1 = arith.constant 0 : i32
    %c0_i32_2 = arith.constant 0 : i32
    %c0_i32_3 = arith.constant 0 : i32
    return %arg0, %c0_i32, %c0_i32_0, %c0_i32_1, %c0_i32_2 : i32, i32, i32, i32, i32
  }
}

</mosaic_0001>

<bundles_post_ra>
// kernel: video_prediction_embedder_forward.1
= control target key start
LH: loop header
LB: loop body
LE: loop exit
PB: predicated region body
PF: predicated region fallthrough
CT: control target
= control target key end

     0   :  { %s1443_s21 = smov 0   ;;  %s1857_s0 = inlined_call_operand.vmem [shape: bf16[4,4,256], index: 0, kind: input, shape index: {}]   ;;  %s1858_s1 = inlined_call_operand.vmem [shape: f32[9,1,256], index: 1, kind: input, shape index: {}]   ;;  %s1859_s2 = inlined_call_operand.vmem [shape: bf16[32,36], index: 2, kind: input, shape index: {}]   ;;  %s1860_s3 = inlined_call_operand.vmem [shape: f32[32,1], index: 3, kind: input, shape index: {}]   ;;  %s1861_s4 = inlined_call_operand.vmem [shape: bf16[8,32], index: 4, kind: input, shape index: {}]   ;;  %s1862_s5 = inlined_call_operand.vmem [shape: f32[8,1], index: 5, kind: input, shape index: {}]   ;;  %s1863_s6 = inlined_call_operand.vmem [shape: f32[2,2,2,8,256], index: 6, kind: output, shape index: {}]  }
   0x1 LB: > { %s1449_s22 = sadd.s32 4294967295, %s1397_s21   ;;  %p1169_p0 = scmp.ge.s32.totalorder %s1397_s21, 1  ;;  %s1397_s21 = sphi %s1443_s21, %s16_s21  }
   0x2   : > { %p214_p1 = scmp.lt.s32.totalorder %s1397_s21, 3 }
   0x4   : > { %p215_p2 = pnand %p1169_p0, %p214_p1 }
   0x5   : > { %s1170_s23 = sshll.u32 (!%p215_p2), %s1449_s22, 1  ;;  %s1399_s28 = smov (!%p215_p2), 127  }
   0x6   : > { %218 = sbr.rel (%p215_p2) target bundleno = 638 (0x27e), region = 44  ;;  %p246_p3 = scmp.lt.s32.totalorder (!%p215_p2), %s1170_s23, 3 }
   0x7   : > { %s1400_s29 = smov (!%p215_p2), 111   ;;  %s1401_s30 = smov (!%p215_p2), 112  }
   0x8   : > { %s1402_s7 = smov (!%p215_p2), 113   ;;  %s1403_s8 = smov (!%p215_p2), 1  }
   0x9   : > { %s1404_s9 = smov (!%p215_p2), 16   ;;  %s1405_s10 = smov (!%p215_p2), 15  }
   0xa   : > { %s1406_s11 = smov (!%p215_p2), 17   ;;  %p252_p4 = scmp.lt.s32.totalorder (!%p215_p2), %s1449_s22, 1 }
   0xb   : > { %s1865_s23 = smov (!%p246_p3, %s1170_s23), 3  ;;  %v1407_v7 = vmov 0   ;;  %v729_v8 = vld [vmem:[%s1860_s3 + $0x18] sm:$0xff]  ;;  %v728_v9 = vld [vmem:[%s1860_s3 + $0x10] sm:$0xff]  ;;  %v726_v10 = vld [vmem:[%s1860_s3] sm:$0xff]  ;;  %v267_v13 = vlaneseq  ;;  %vm767_vm6 = vcmask 1041408  }
   0xc   : > { %s1224_s24 = sshll.u32 %s1865_s23, 2  ;;  %812 = vmatprep.mubr.bf16.mxu0 %v1407_v7  ;;  %865 = vmatprep.mubr.bf16.mxu1 %v1407_v7  ;;  %v727_v11 = vld [vmem:[%s1860_s3 + $0x8] sm:$0xff]  ;;  %v1007_v12 = vld [vmem:[%s1862_s5] sm:$0xff]  ;;  %v1181_v19 = vld [vmem:[%s1858_s1 + $0x10] sm:$0x3]  ;;  %vm760_vm9 = vcmask 293888  }
   0xd   : > { %s250_s27 = scalar_lea.vmem %s1857_s0, %s1224_s24  ;;  %1324 = vset.pattern.permute.xlu1 %v1407_v7  ;;  %1323 = vset.pattern.permute.xlu0 %v1407_v7  ;;  %v275_v14 = vshrl.u32 %v267_v13, 7  ;;  %v1476_v15 = vand.u32 127, %v267_v13  ;;  %v1178_v18 = vld [vmem:[%s1858_s1 + $0xa] sm:$0x3]  ;;  %v1491_v20 = vld [vmem:[%s1858_s1 + $0xe] sm:$0x3] }
   0xe   : > { %v258_v0 = vld [vmem:[%s250_s27] sm:$0xff]   ;;  %v1497_v21 = vld [vmem:[%s1858_s1 + $0x10] sm:$0x3]  ;;  %v1502_v22 = vld [vmem:[%s1858_s1 + $0xe] sm:$0x3]  ;;  %vm1013_vm10 = vcmask 261120  }
   0xf   : > { %v259_v1 = vunpack.c.l.bf16 %v258_v0  ;;  %v484_v2 = vunpack.c.h.bf16 %v258_v0  ;;  %v1478_v16 = vsub.s32 0, %v275_v14  ;;  %v1480_v17 = vsub.s32 1, %v275_v14  ;;  %v1511_v26 = vld [vmem:[%s1858_s1 + $0xa] sm:$0x3]  ;;  %v1516_v27 = vld [vmem:[%s1858_s1 + $0xc] sm:$0x3] }
  0x10   : > { %vm378_vm0 = vcmp.lt.s32.totalorder %v1476_v15, 127  ;;  %vm462_vm1 = vcmp.lt.s32.totalorder %v1476_v15, 111  ;;  %vm432_vm2 = vcmp.lt.s32.totalorder %v1476_v15, 112  ;;  %v1527_v31 = vld [vmem:[%s1858_s1 + $0xc] sm:$0x3]  ;;  %vm408_vm3 = vcmp.lt.s32.totalorder %v1476_v15, 113 }
  0x11   : > { %v261_v3 = vcombine.high %v259_v1, %v259_v1  ;;  %372 = vst [vmem:[#allocation2 + $0x60] sm:$0xf] %v259_v1  ;;  %v486_v4 = vcombine.high %v484_v2, %v484_v2  ;;  %588 = vst [vmem:[#allocation2 + $0x98] sm:$0xf] %v484_v2  ;;  %v387_v23 = vrot.slane %v1178_v18, %v1478_v16  ;;  %v1532_v32 = vld [vmem:[%s1858_s1 + $0x6] sm:$0x3] }
  0x12   : > { %v391_v24 = vrot.slane %v1178_v18, %v1480_v17  ;;  %v471_v25 = vrot.slane %v1181_v19, %v1478_v16  ;;  %v475_v28 = vrot.slane %v1181_v19, %v1480_v17  ;;  %v441_v29 = vrot.slane %v1491_v20, %v1478_v16  ;;  %v1545_v37 = vld [vmem:[%s1858_s1 + $0x2] sm:$0x3]  ;;  %v1550_v38 = vld [vmem:[%s1858_s1 + $0x6] sm:$0x3]  ;;  %v1576_v48 = vld [vmem:[%s1858_s1 + $0x4] sm:$0x3] }
  0x13   : > { %v1253_v5 = vpack.i.bf16 %v261_v3, %v259_v1  ;;  %373 = vst [vmem:[#allocation2 + $0x38] sm:$0xf] %v261_v3  ;;  %589 = vst [vmem:[#allocation2 + $0x30] sm:$0xf] %v486_v4  ;;  %v1248_v6 = vpack.i.bf16 %v486_v4, %v484_v2  ;;  %v445_v30 = vrot.slane %v1491_v20, %v1480_v17  ;;  %v1571_v47 = vld [vmem:[%s1858_s1 + $0x2] sm:$0x3] }
  0x14   : > { %v679_v33 = vrot.slane %v1497_v21, %v1478_v16  ;;  %v683_v34 = vrot.slane %v1497_v21, %v1480_v17  ;;  %v651_v35 = vrot.slane %v1502_v22, %v1478_v16  ;;  %v655_v36 = vrot.slane %v1502_v22, %v1480_v17  ;;  %v1605_v3 = vld [vmem:[%s1858_s1] sm:$0x3]  ;;  %s1867_s22 = smov (!%p252_p4, %s1449_s22), 1 }
  0x15   : > { %1254 = vrot.lane.b32.xlu1 %v1253_v5, %s1399_s28  ;;  %1244 = vrot.lane.b32.xlu0 %v1253_v5, %s1400_s29  ;;  %v601_v39 = vrot.slane %v1511_v26, %v1478_v16  ;;  %v605_v40 = vrot.slane %v1511_v26, %v1480_v17  ;;  %v629_v41 = vrot.slane %v1516_v27, %v1478_v16  ;;  %vm346_vm4 = vcmp.lt.s32.totalorder %v1476_v15, 1  ;;  %s1225_s16 = sshll.u32 %s1867_s22, 6 }
  0x16   : > { %v633_v42 = vrot.slane %v1516_v27, %v1480_v17  ;;  %v417_v43 = vrot.slane %v1527_v31, %v1478_v16  ;;  %v421_v44 = vrot.slane %v1527_v31, %v1480_v17  ;;  %v355_v45 = vrot.slane %v1532_v32, %v1478_v16  ;;  %s256_s19 = scalar_lea.vmem %s1863_s6, %s1225_s16 }
  0x17   : > { %v359_v46 = vrot.slane %v1532_v32, %v1480_v17  ;;  %v301_v51 = vrot.slane %v1545_v37, %v1478_v16  ;;  %v305_v52 = vrot.slane %v1545_v37, %v1480_v17  ;;  %v571_v53 = vrot.slane %v1550_v38, %v1478_v16  ;;  %v1705_v32 = vld [vmem:[%s1858_s1] sm:$0x3] }
  0x18   : > { %v575_v54 = vrot.slane %v1550_v38, %v1480_v17  ;;  %v521_v59 = vrot.slane %v1571_v47, %v1478_v16  ;;  %v525_v60 = vrot.slane %v1571_v47, %v1480_v17  ;;  %v331_v61 = vrot.slane %v1576_v48, %v1478_v16 }
  0x19   : > { %1259 = vrot.lane.b32.xlu1 %v1253_v5, %s1401_s30  ;;  %1249 = vrot.lane.b32.xlu0 %v1248_v6, %s1400_s29  ;;  %v335_v62 = vrot.slane %v1576_v48, %v1480_v17  ;;  %v277_v21 = vrot.slane %v1605_v3, %v1478_v16  ;;  %vm292_vm5 = vcmp.lt.s32.totalorder %v1476_v15, 16  ;;  %vm322_vm7 = vcmp.lt.s32.totalorder %v1476_v15, 15 }
  0x1a   : > { %vm269_vm8 = vcmp.lt.s32.totalorder %v1476_v15, 17 }
  0x1d   : > { %1269 = vrot.lane.b32.xlu1 %v1248_v6, %s1401_s30  ;;  %1264 = vrot.lane.b32.xlu0 %v1248_v6, %s1399_s28 }
  0x21   : > { %1279 = vrot.lane.b32.xlu1 %v1248_v6, %s1402_s7  ;;  %1274 = vrot.lane.b32.xlu0 %v1253_v5, %s1402_s7 }
  0x25   : > { %1289 = vrot.lane.b32.xlu1 %v1253_v5, %s1403_s8  ;;  %1284 = vrot.lane.b32.xlu0 %v1253_v5, %s1404_s9 }
  0x29   : > { %1299 = vrot.lane.b32.xlu1 %v1248_v6, %s1403_s8  ;;  %1294 = vrot.lane.b32.xlu0 %v1248_v6, %s1404_s9 }
  0x2d   : > { %1309 = vrot.lane.b32.xlu1 %v1253_v5, %s1405_s10  ;;  %1304 = vrot.lane.b32.xlu0 %v1253_v5, %s1406_s11 }
  0x31   : > { %1319 = vrot.lane.b32.xlu1 %v1248_v6, %s1405_s10  ;;  %1314 = vrot.lane.b32.xlu0 %v1248_v6, %s1406_s11 }
  0x35   : > { %747 = vperm.xlu1 %1324, %v729_v8   ;;  %742 = vperm.xlu0 %1323, %v728_v9  }
  0x39   : > { %732 = vperm.xlu1 %1324, %v726_v10   ;;  %737 = vperm.xlu0 %1323, %v727_v11  }
  0x3d   : > { %1010 = vperm.xlu1 %1324, %v1007_v12  }
  0x87   : > { %v1255_v49 = vpop.permute.xlu1 %1254  ;;  %v1245_v50 = vpop.permute.xlu0 %1244 }
  0x88   : > { %v1257_v55 = vunpack.i.h.bf16 %v1255_v49  ;;  %v1256_v56 = vunpack.i.l.bf16 %v1255_v49  ;;  %v1247_v57 = vunpack.i.h.bf16 %v1245_v50  ;;  %v1246_v58 = vunpack.i.l.bf16 %v1245_v50  ;;  %v1623_v50 = vld [vmem:[%s1858_s1 + $0x4] sm:$0x3] }
  0x89   : > { %v549_v20 = vrot.slane %v1623_v50, %v1478_v16 }
  0x8a   : > { %v379_v63 = vsel %vm378_vm0, %v1256_v56, %v1257_v55  ;;  %v380_v0 = vsel %vm378_vm0, %v1257_v55, %v1256_v56  ;;  %v463_v1 = vsel %vm462_vm1, %v1246_v58, %v1247_v57  ;;  %v464_v2 = vsel %vm462_vm1, %v1247_v57, %v1246_v58 }
  0x8b   : > { %v394_v4 = vmul.f32 %v387_v23, %v379_v63  ;;  %v395_v5 = vmul.f32 %v391_v24, %v380_v0  ;;  %v478_v6 = vmul.f32 %v471_v25, %v463_v1  ;;  %v479_v8 = vmul.f32 %v475_v28, %v464_v2  ;;  %v1260_v9 = vpop.permute.xlu1 %1259  ;;  %v1250_v10 = vpop.permute.xlu0 %1249 }
  0x8c   : > { %v1262_v11 = vunpack.i.h.bf16 %v1260_v9  ;;  %v1261_v12 = vunpack.i.l.bf16 %v1260_v9  ;;  %v1252_v13 = vunpack.i.h.bf16 %v1250_v10  ;;  %v1251_v14 = vunpack.i.l.bf16 %v1250_v10 }
  0x8d   : > { %v398_v18 = vrot.slane %v394_v4, 4  ;;  %v399_v19 = vrot.slane %v395_v5, 4  ;;  %480 = vst [vmem:[#allocation2 + $0x8] sm:$0xf] %v478_v6  ;;  %481 = vst [vmem:[#allocation2 + $0x78] sm:$0xf] %v479_v8  ;;  %v281_v23 = vrot.slane %v1605_v3, %v1480_v17 }
  0x8e   : > { %v433_v24 = vsel %vm432_vm2, %v1261_v12, %v1262_v11  ;;  %v434_v25 = vsel %vm432_vm2, %v1262_v11, %v1261_v12  ;;  %v672_v28 = vsel %vm462_vm1, %v1251_v14, %v1252_v13  ;;  %v673_v49 = vsel %vm462_vm1, %v1252_v13, %v1251_v14 }
  0x8f   : > { %402 = vst [vmem:[#allocation2 + $0x60] sm:$0xf0] %v398_v18  ;;  %403 = vst [vmem:[#allocation2 + $0x38] sm:$0xf0] %v399_v19  ;;  %v448_v55 = vmul.f32 %v441_v29, %v433_v24  ;;  %v449_v56 = vmul.f32 %v445_v30, %v434_v25  ;;  %v686_v57 = vmul.f32 %v679_v33, %v672_v28  ;;  %v1270_v63 = vpop.permute.xlu1 %1269  ;;  %v1265_v0 = vpop.permute.xlu0 %1264 }
  0x90   : > { %v687_v58 = vmul.f32 %v683_v34, %v673_v49  ;;  %v1272_v1 = vunpack.i.h.bf16 %v1270_v63  ;;  %v1271_v2 = vunpack.i.l.bf16 %v1270_v63  ;;  %v1267_v4 = vunpack.i.h.bf16 %v1265_v0 }
  0x91   : > { %v1266_v5 = vunpack.i.l.bf16 %v1265_v0  ;;  %v452_v6 = vrot.slane %v448_v55, 4  ;;  %v453_v8 = vrot.slane %v449_v56, 4  ;;  %688 = vst [vmem:[#allocation2 + $0x50] sm:$0xf] %v686_v57  ;;  %v553_v29 = vrot.slane %v1623_v50, %v1480_v17 }
  0x92   : > { %689 = vst [vmem:[#allocation2 + $0x90] sm:$0xf] %v687_v58  ;;  %v644_v30 = vsel %vm432_vm2, %v1271_v2, %v1272_v1  ;;  %v645_v33 = vsel %vm432_vm2, %v1272_v1, %v1271_v2 }
  0x93   : > { %v594_v34 = vsel %vm378_vm0, %v1266_v5, %v1267_v4  ;;  %v595_v9 = vsel %vm378_vm0, %v1267_v4, %v1266_v5  ;;  %456 = vst [vmem:[#allocation2 + $0x58] sm:$0xf0] %v452_v6  ;;  %457 = vst [vmem:[#allocation2 + $0x70] sm:$0xf0] %v453_v8  ;;  %v658_v10 = vmul.f32 %v651_v35, %v644_v30  ;;  %v1280_v14 = vpop.permute.xlu1 %1279  ;;  %v1275_v18 = vpop.permute.xlu0 %1274 }
  0x94   : > { %v659_v11 = vmul.f32 %v655_v36, %v645_v33  ;;  %v608_v12 = vmul.f32 %v601_v39, %v594_v34  ;;  %v609_v13 = vmul.f32 %v605_v40, %v595_v9  ;;  %v1282_v19 = vunpack.i.h.bf16 %v1280_v14  ;;  %v707_v40 = vld [vmem:[#allocation2 + $0x78] sm:$0xf]  ;;  %v706_v57 = vld [vmem:[#allocation2 + $0x8] sm:$0xf] }
  0x95   : > { %v1281_v24 = vunpack.i.l.bf16 %v1280_v14  ;;  %v1277_v25 = vunpack.i.h.bf16 %v1275_v18  ;;  %v1276_v28 = vunpack.i.l.bf16 %v1275_v18  ;;  %v662_v49 = vrot.slane %v658_v10, 4 }
  0x96   : > { %v663_v35 = vrot.slane %v659_v11, 4  ;;  %v612_v55 = vrot.slane %v608_v12, 4  ;;  %v613_v56 = vrot.slane %v609_v13, 4  ;;  %v719_v27 = vpack.c.bf16 %v707_v40, %v707_v40 }
  0x97   : > { %v622_v22 = vsel %vm408_vm3, %v1281_v24, %v1282_v19  ;;  %v623_v36 = vsel %vm408_vm3, %v1282_v19, %v1281_v24  ;;  %v409_v26 = vsel %vm408_vm3, %v1276_v28, %v1277_v25  ;;  %v410_v39 = vsel %vm408_vm3, %v1277_v25, %v1276_v28  ;;  %666 = vst [vmem:[#allocation2 + $0x40] sm:$0xf0] %v662_v49  ;;  %v1290_v2 = vpop.permute.xlu1 %1289  ;;  %v1285_v4 = vpop.permute.xlu0 %1284 }
  0x98   : > { %667 = vst [vmem:[#allocation2 + $0x88] sm:$0xf0] %v663_v35  ;;  %616 = vst [vmem:[#allocation2 + $0x98] sm:$0xf0] %v612_v55  ;;  %v636_v58 = vmul.f32 %v629_v41, %v622_v22  ;;  %v637_v63 = vmul.f32 %v633_v42, %v623_v36  ;;  %v424_v0 = vmul.f32 %v417_v43, %v409_v26  ;;  %v1292_v5 = vunpack.i.h.bf16 %v1290_v2  ;;  %v708_v33 = vld [vmem:[#allocation2 + $0x50] sm:$0xf] }
  0x99   : > { %617 = vst [vmem:[#allocation2 + $0x30] sm:$0xf0] %v613_v56  ;;  %v425_v1 = vmul.f32 %v421_v44, %v410_v39  ;;  %v1291_v6 = vunpack.i.l.bf16 %v1290_v2  ;;  %v1287_v8 = vunpack.i.h.bf16 %v1285_v4  ;;  %v1286_v41 = vunpack.i.l.bf16 %v1285_v4  ;;  %v709_v30 = vld [vmem:[#allocation2 + $0x90] sm:$0xf]  ;;  %1192 = vmatprep.subr.msk.bf16.mxu0 %vm767_vm6, %v719_v27 }
  0x9a   : > { %638 = vst [vmem:[#allocation2 + $0x40] sm:$0xf] %v636_v58  ;;  %639 = vst [vmem:[#allocation2 + $0x88] sm:$0xf] %v637_v63  ;;  %v718_v42 = vpack.c.bf16 %v706_v57, %v706_v57  ;;  %v721_v43 = vpack.c.bf16 %v709_v30, %v709_v30  ;;  %v720_v34 = vpack.c.bf16 %v708_v33, %v708_v33 }
  0x9b   : > { %426 = vst [vmem:[#allocation2 + $0x58] sm:$0xf] %v424_v0  ;;  %427 = vst [vmem:[#allocation2 + $0x70] sm:$0xf] %v425_v1  ;;  %v347_v31 = vsel %vm346_vm4, %v1291_v6, %v1292_v5  ;;  %v348_v44 = vsel %vm346_vm4, %v1292_v5, %v1291_v6  ;;  %v293_v9 = vsel %vm292_vm5, %v1286_v41, %v1287_v8  ;;  %v1300_v18 = vpop.permute.xlu1 %1299  ;;  %v1295_v19 = vpop.permute.xlu0 %1294 }
  0x9c   : > { %v294_v10 = vsel %vm292_vm5, %v1287_v8, %v1286_v41  ;;  %v362_v11 = vmul.f32 %v355_v45, %v348_v44  ;;  %v363_v12 = vmul.f32 %v359_v46, %v347_v31  ;;  %v309_v14 = vmul.f32 %v305_v52, %v293_v9  ;;  %1195 = vmatprep.subr.msk.bf16.mxu1 %vm767_vm6, %v721_v43 }
  0x9d   : > { %v308_v13 = vmul.f32 %v301_v51, %v294_v10  ;;  %v769_v24 = vsel %vm767_vm6, %v718_v42, 0  ;;  %v1302_v25 = vunpack.i.h.bf16 %v1300_v18  ;;  %v1301_v45 = vunpack.i.l.bf16 %v1300_v18  ;;  %v699_v10 = vld [vmem:[#allocation2 + $0x38] sm:$0xff] }
  0x9e   : > { %v1297_v28 = vunpack.i.h.bf16 %v1295_v19  ;;  %v366_v46 = vrot.slane %v362_v11, 4  ;;  %v367_v51 = vrot.slane %v363_v12, 4  ;;  %v313_v52 = vrot.slane %v309_v14, 4  ;;  %791 = vmatpush1.bf16.msra.mxu0 %v769_v24 }
  0x9f   : > { %v312_v37 = vrot.slane %v308_v13, 4  ;;  %v564_v49 = vsel %vm346_vm4, %v1301_v45, %v1302_v25  ;;  %v565_v35 = vsel %vm346_vm4, %v1302_v25, %v1301_v45  ;;  %v1296_v55 = vunpack.i.l.bf16 %v1295_v19  ;;  %v1310_v26 = vpop.permute.xlu1 %1309  ;;  %v1305_v39 = vpop.permute.xlu0 %1304  ;;  %v698_v45 = vld [vmem:[#allocation2 + $0x60] sm:$0xff] }
  0xa0   : > { %v775_v56 = vsel %vm767_vm6, %v720_v34, 0  ;;  %370 = vst [vmem:[#allocation2 + $0x10] sm:$0xf0] %v366_v46  ;;  %371 = vst [vmem:[#allocation2 + $0x28] sm:$0xf0] %v367_v51  ;;  %v578_v22 = vmul.f32 %v571_v53, %v565_v35  ;;  %v579_v36 = vmul.f32 %v575_v54, %v564_v49  ;;  %v499_v40 = vrot.slane %v1705_v32, %v1478_v16  ;;  %v701_v11 = vld [vmem:[#allocation2 + $0x30] sm:$0xff] }
  0xa1   : > { %316 = vst [vmem:[#allocation2] sm:$0xf0] %v312_v37  ;;  %317 = vst [vmem:[#allocation2 + $0x68] sm:$0xf0] %v313_v52  ;;  %844 = vmatpush1.bf16.msra.mxu1 %v775_v56  ;;  %v503_v57 = vrot.slane %v1705_v32, %v1480_v17  ;;  %v514_v58 = vsel %vm292_vm5, %v1296_v55, %v1297_v28  ;;  %v515_v63 = vsel %vm292_vm5, %v1297_v28, %v1296_v55  ;;  %v705_v42 = vld [vmem:[#allocation2 + $0x88] sm:$0xff]  ;;  %v704_v24 = vld [vmem:[#allocation2 + $0x40] sm:$0xff] }
  0xa2   : > { %v1312_v53 = vunpack.i.h.bf16 %v1310_v26  ;;  %v1311_v0 = vunpack.i.l.bf16 %v1310_v26  ;;  %v582_v1 = vrot.slane %v578_v22, 4  ;;  %v583_v38 = vrot.slane %v579_v36, 4  ;;  %v703_v27 = vld [vmem:[#allocation2 + $0x70] sm:$0xff]  ;;  %v702_v12 = vld [vmem:[#allocation2 + $0x58] sm:$0xff]  ;;  %v1325_v35 = vld [vmem:[%s1859_s2] sm:$0xff]  }
  0xa3   : > { %v528_v54 = vmul.f32 %v521_v59, %v515_v63  ;;  %v529_v2 = vmul.f32 %v525_v60, %v514_v58  ;;  %v1307_v6 = vunpack.i.h.bf16 %v1305_v39  ;;  %v1306_v8 = vunpack.i.l.bf16 %v1305_v39  ;;  %v1320_v60 = vpop.permute.xlu1 %1319  ;;  %v1315_v33 = vpop.permute.xlu0 %1314  ;;  %v700_v51 = vld [vmem:[#allocation2 + $0x98] sm:$0xff]  ;;  %v1326_v26 = vld [vmem:[%s1859_s2 + $0x8] sm:$0xff]  }
  0xa4   : > { %v323_v4 = vsel %vm322_vm7, %v1311_v0, %v1312_v53  ;;  %v324_v5 = vsel %vm322_vm7, %v1312_v53, %v1311_v0  ;;  %586 = vst [vmem:[#allocation2 + $0x18] sm:$0xf0] %v582_v1  ;;  %587 = vst [vmem:[#allocation2 + $0x20] sm:$0xf0] %v583_v38  ;;  %v1322_v31 = vunpack.i.h.bf16 %v1320_v60  ;;  %v1321_v44 = vunpack.i.l.bf16 %v1320_v60 }
  0xa5   : > { %v532_v41 = vrot.slane %v528_v54, 4  ;;  %v533_v30 = vrot.slane %v529_v2, 4  ;;  %v338_v59 = vmul.f32 %v331_v61, %v324_v5  ;;  %v339_v47 = vmul.f32 %v335_v62, %v323_v4 }
  0xa6   : > { %v270_v43 = vsel %vm269_vm8, %v1306_v8, %v1307_v6  ;;  %v271_v34 = vsel %vm269_vm8, %v1307_v6, %v1306_v8  ;;  %v1317_v62 = vunpack.i.h.bf16 %v1315_v33  ;;  %v1316_v9 = vunpack.i.l.bf16 %v1315_v33 }
  0xa7   : > { %536 = vst [vmem:[#allocation2 + $0x48] sm:$0xf0] %v532_v41  ;;  %537 = vst [vmem:[#allocation2 + $0x80] sm:$0xf0] %v533_v30  ;;  %v284_v48 = vmul.f32 %v277_v21, %v271_v34  ;;  %v285_v61 = vmul.f32 %v281_v23, %v270_v43  ;;  %v542_v13 = vsel %vm322_vm7, %v1321_v44, %v1322_v31 }
  0xa8   : > { %340 = vst [vmem:[#allocation2 + $0x10] sm:$0xf] %v338_v59  ;;  %341 = vst [vmem:[#allocation2 + $0x28] sm:$0xf] %v339_v47  ;;  %v543_v14 = vsel %vm322_vm7, %v1322_v31, %v1321_v44  ;;  %v715_v18 = vpack.c.bf16 %v703_v27, %v699_v10  ;;  %v717_v19 = vpack.c.bf16 %v705_v42, %v701_v11 }
  0xa9   : > { %286 = vst [vmem:[#allocation2] sm:$0xf] %v284_v48  ;;  %287 = vst [vmem:[#allocation2 + $0x68] sm:$0xf] %v285_v61  ;;  %v556_v3 = vmul.f32 %v549_v20, %v543_v14  ;;  %v557_v21 = vmul.f32 %v553_v29, %v542_v13  ;;  %v492_v23 = vsel %vm269_vm8, %v1316_v9, %v1317_v62 }
  0xaa   : > { %v493_v25 = vsel %vm269_vm8, %v1317_v62, %v1316_v9  ;;  %v507_v32 = vmul.f32 %v503_v57, %v492_v23  ;;  %792 = vmatprep.subr.bf16.mxu0 %v715_v18  ;;  %845 = vmatprep.subr.bf16.mxu1 %v717_v19  ;;  %v714_v46 = vpack.c.bf16 %v702_v12, %v698_v45 }
  0xab   : > { %v506_v28 = vmul.f32 %v499_v40, %v493_v25  ;;  %558 = vst [vmem:[#allocation2 + $0x18] sm:$0xf] %v556_v3  ;;  %559 = vst [vmem:[#allocation2 + $0x20] sm:$0xf] %v557_v21  ;;  %v716_v16 = vpack.c.bf16 %v704_v24, %v700_v51 }
  0xac   : > { %509 = vst [vmem:[#allocation2 + $0x80] sm:$0xf] %v507_v32  ;;  %793 = vmatpush1.bf16.msra.mxu0 %v714_v46 }
  0xad   : > { %508 = vst [vmem:[#allocation2 + $0x48] sm:$0xf] %v506_v28  ;;  %846 = vmatpush1.bf16.msra.mxu1 %v716_v16 }
  0xaf   : > { %v695_v17 = vld [vmem:[#allocation2 + $0x28] sm:$0xff]  ;;  %v694_v50 = vld [vmem:[#allocation2 + $0x10] sm:$0xff] }
  0xb0   : > { %v691_v20 = vld [vmem:[#allocation2 + $0x68] sm:$0xff]  ;;  %v690_v29 = vld [vmem:[#allocation2] sm:$0xff]  ;;  %v1776_v39 = vpop.permute.xlu1 %747  ;;  %v743_v40 = vpop.permute.xlu0 %742 }
  0xb1   : > { %v711_v15 = vpack.c.bf16 %v695_v17, %v691_v20  ;;  %v710_v37 = vpack.c.bf16 %v694_v50, %v690_v29 }
  0xb2   : > { %v697_v52 = vld [vmem:[#allocation2 + $0x20] sm:$0xff]  ;;  %v696_v49 = vld [vmem:[#allocation2 + $0x18] sm:$0xff] }
  0xb3   : > { %794 = vmatprep.subr.bf16.mxu0 %v711_v15  ;;  %v693_v55 = vld [vmem:[#allocation2 + $0x80] sm:$0xff] }
  0xb4   : > { %v692_v56 = vld [vmem:[#allocation2 + $0x48] sm:$0xff]  ;;  %795 = vmatpush1.bf16.msra.mxu0 %v710_v37  ;;  %v713_v22 = vpack.c.bf16 %v697_v52, %v693_v55  ;;  %v733_v57 = vpop.permute.xlu1 %732  ;;  %v738_v0 = vpop.permute.xlu0 %737 }
  0xb5   : > { %v712_v36 = vpack.c.bf16 %v696_v49, %v692_v56 }
  0xb6   : > { %847 = vmatprep.subr.bf16.mxu1 %v713_v22 }
  0xb7   : > { %1193 = vmatmul.mubr.msk.bf16.vlgmr.msra.gmra.mxu0 %vm760_vm9, %v1325_v35  ;;  %848 = vmatpush1.bf16.msra.mxu1 %v712_v36 }
  0xb8   : > { %822 = vmatprep.mubr.bf16.mxu0 %v1407_v7 }
  0xba   : > { %1196 = vmatmul.mubr.msk.bf16.vlgmr.msra.gmra.mxu1 %vm760_vm9, %v1325_v35 }
  0xbb   : > { %875 = vmatprep.mubr.bf16.mxu1 %v1407_v7 }
  0xbf   : > { %1194 = vmatmul.mubr.msk.bf16.gmra.mxu0 %vm760_vm9, %v1326_v26 }
  0xc0   : > { %1049 = vmatprep.mubr.bf16.mxu0 %v1407_v7 }
  0xc2   : > { %1197 = vmatmul.mubr.msk.bf16.gmra.mxu1 %vm760_vm9, %v1326_v26 }
  0xc3   : > { %1090 = vmatprep.mubr.bf16.mxu1 %v1407_v7 }
 0x177   : > { %v814_v58 = vpop.f32.mrf.mxu0 }
 0x178   : > { %v1778_v63 = vadd.f32 %v814_v58, %v733_v57 }
 0x179   : > { %v816_v53 = vpop.f32.mrf.mxu0 }
 0x17a   : > { %v1198_v1 = vmul.f32 -1.442695, %v1778_v63  ;;  %v1781_v38 = vadd.f32 %v816_v53, %v733_v57  ;;  %v867_v54 = vpop.f32.mrf.mxu1 }
 0x17b   : > { %v818_v2 = vpop.f32.mrf.mxu0  ;;  %v1806_v12 = vadd.f32 %v867_v54, %v733_v57 }
 0x17c   : > { %1327 = vpow2.f32 %v1198_v1  ;;  %v1199_v4 = vmul.f32 -1.442695, %v1781_v38  ;;  %v1784_v5 = vadd.f32 %v818_v2, %v738_v0  ;;  %v869_v7 = vpop.f32.mrf.mxu1 }
 0x17d   : > { %v820_v6 = vpop.f32.mrf.mxu0  ;;  %v1786_v8 = vadd.f32 %v869_v7, %v733_v57  ;;  %v1200_v32 = vmul.f32 -1.442695, %v1806_v12 }
 0x17e   : > { %1329 = vpow2.f32 %v1199_v4  ;;  %v1202_v41 = vmul.f32 -1.442695, %v1784_v5  ;;  %v1789_v30 = vadd.f32 %v820_v6, %v738_v0  ;;  %v871_v59 = vpop.f32.mrf.mxu1 }
 0x17f   : > { %v1201_v47 = vmul.f32 -1.442695, %v1786_v8  ;;  %v824_v60 = vpop.f32.mrf.mxu0  ;;  %v1792_v33 = vadd.f32 %v871_v59, %v738_v0 }
 0x180   : > { %1331 = vpow2.f32 %v1202_v41  ;;  %v1203_v27 = vmul.f32 -1.442695, %v1789_v30  ;;  %v1795_v42 = vadd.f32 %v824_v60, %v743_v40  ;;  %v873_v43 = vpop.f32.mrf.mxu1 }
 0x181   : > { %1333 = vpow2.f32 %v1201_v47  ;;  %v1204_v34 = vmul.f32 -1.442695, %v1792_v33  ;;  %v826_v31 = vpop.f32.mrf.mxu0  ;;  %v1798_v44 = vadd.f32 %v873_v43, %v738_v0 }
 0x182   : > { %1335 = vpow2.f32 %v1203_v27  ;;  %v1206_v48 = vmul.f32 -1.442695, %v1795_v42  ;;  %v1801_v61 = vadd.f32 %v826_v31, %v743_v40  ;;  %v877_v62 = vpop.f32.mrf.mxu1 }
 0x183   : > { %1337 = vpow2.f32 %v1204_v34  ;;  %v1205_v9 = vmul.f32 -1.442695, %v1798_v44  ;;  %v828_v10 = vpop.f32.mrf.mxu0  ;;  %v1804_v11 = vadd.f32 %v877_v62, %v743_v40 }
 0x184   : > { %1339 = vpow2.f32 %v1206_v48  ;;  %v1207_v13 = vmul.f32 -1.442695, %v1801_v61  ;;  %v1810_v14 = vadd.f32 %v828_v10, %v1776_v39  ;;  %v879_v18 = vpop.f32.mrf.mxu1 }
 0x185   : > { %1341 = vpow2.f32 %v1205_v9  ;;  %v1208_v19 = vmul.f32 -1.442695, %v1804_v11  ;;  %v830_v24 = vpop.f32.mrf.mxu0  ;;  %v1813_v3 = vadd.f32 %v879_v18, %v743_v40 }
 0x186   : > { %1343 = vpow2.f32 %v1207_v13  ;;  %v1210_v21 = vmul.f32 -1.442695, %v1810_v14  ;;  %v1817_v23 = vadd.f32 %v830_v24, %v1776_v39  ;;  %v881_v25 = vpop.f32.mrf.mxu1 }
 0x187   : > { %1345 = vpow2.f32 %v1208_v19  ;;  %v1209_v45 = vmul.f32 -1.442695, %v1813_v3  ;;  %v1821_v28 = vadd.f32 %v881_v25, %v1776_v39 }
 0x188   : > { %1347 = vpow2.f32 %v1210_v21  ;;  %v1211_v46 = vmul.f32 -1.442695, %v1817_v23  ;;  %v883_v51 = vpop.f32.mrf.mxu1 }
 0x189   : > { %v1328_v16 = vpop.eup %1327  ;;  %1349 = vpow2.f32 %v1209_v45  ;;  %v1212_v17 = vmul.f32 -1.442695, %v1821_v28  ;;  %v1827_v50 = vadd.f32 %v883_v51, %v1776_v39 }
 0x18a   : > { %1351 = vpow2.f32 %v1211_v46  ;;  %v934_v15 = vadd.f32 1.0, %v1328_v16 }
 0x18b   : > { %v1330_v20 = vpop.eup %1329  ;;  %1353 = vpow2.f32 %v1212_v17  ;;  %v1213_v29 = vmul.f32 -1.442695, %v1827_v50 }
 0x18c   : > { %1355 = vpow2.f32 %v1200_v32  ;;  %v935_v52 = vadd.f32 1.0, %v1330_v20 }
 0x18d   : > { %v1332_v37 = vpop.eup %1331  ;;  %1357 = vpow2.f32 %v1213_v29 }
 0x18e   : > { %v1334_v49 = vpop.eup %1333  ;;  %v938_v35 = vadd.f32 1.0, %v1332_v37  ;;  %1359 = vrcp.f32 %v934_v15 }
 0x18f   : > { %v1336_v55 = vpop.eup %1335  ;;  %v937_v56 = vadd.f32 1.0, %v1334_v49  ;;  %1361 = vrcp.f32 %v935_v52 }
 0x190   : > { %v1338_v22 = vpop.eup %1337  ;;  %v939_v36 = vadd.f32 1.0, %v1336_v55  ;;  %1363 = vrcp.f32 %v938_v35 }
 0x191   : > { %v1340_v26 = vpop.eup %1339  ;;  %1365 = vrcp.f32 %v937_v56  ;;  %v940_v43 = vadd.f32 1.0, %v1338_v22 }
 0x192   : > { %v1342_v39 = vpop.eup %1341  ;;  %v942_v40 = vadd.f32 1.0, %v1340_v26  ;;  %1367 = vrcp.f32 %v939_v36 }
 0x193   : > { %v1344_v57 = vpop.eup %1343  ;;  %v941_v58 = vadd.f32 1.0, %v1342_v39 }
 0x194   : > { %v1346_v53 = vpop.eup %1345  ;;  %v943_v0 = vadd.f32 1.0, %v1344_v57  ;;  %1369 = vrcp.f32 %v942_v40 }
 0x195   : > { %v1348_v1 = vpop.eup %1347  ;;  %1371 = vrcp.f32 %v941_v58  ;;  %v944_v41 = vadd.f32 1.0, %v1346_v53 }
 0x196   : > { %v1350_v54 = vpop.eup %1349  ;;  %v946_v2 = vadd.f32 1.0, %v1348_v1  ;;  %1373 = vrcp.f32 %v943_v0 }
 0x197   : > { %v1352_v4 = vpop.eup %1351  ;;  %v945_v7 = vadd.f32 1.0, %v1350_v54 }
 0x198   : > { %v1354_v6 = vpop.eup %1353  ;;  %1375 = vrcp.f32 %v946_v2  ;;  %v947_v59 = vadd.f32 1.0, %v1352_v4 }
 0x199   : > { %v1356_v47 = vpop.eup %1355  ;;  %1377 = vrcp.f32 %v945_v7  ;;  %v948_v60 = vadd.f32 1.0, %v1354_v6 }
 0x19a   : > { %v1358_v27 = vpop.eup %1357  ;;  %1379 = vrcp.f32 %v947_v59  ;;  %v936_v31 = vadd.f32 1.0, %v1356_v47 }
 0x19b   : > { %1381 = vrcp.f32 %v948_v60  ;;  %v949_v34 = vadd.f32 1.0, %v1358_v27  ;;  %v1360_v48 = vpop.eup %1359 }
 0x19c   : > { %1383 = vrcp.f32 %v944_v41  ;;  %v1362_v62 = vpop.eup %1361 }
 0x19d   : > { %1385 = vrcp.f32 %v949_v34  ;;  %v1364_v9 = vpop.eup %1363  ;;  %v983_v37 = vmul.f32 %v1362_v62, %v1781_v38  ;;  %v982_v38 = vmul.f32 %v1360_v48, %v1778_v63  ;;  %v998_v63 = vld [vmem:[%s1861_s4] sm:$0xf] }
 0x19e   : > { %1387 = vrcp.f32 %v940_v43  ;;  %v1366_v10 = vpop.eup %1365  ;;  %v986_v52 = vmul.f32 %v1364_v9, %v1784_v5 }
 0x19f   : > { %1389 = vrcp.f32 %v936_v31  ;;  %v1368_v13 = vpop.eup %1367  ;;  %v985_v5 = vmul.f32 %v1366_v10, %v1786_v8 }
 0x1a0   : > { %v987_v51 = vmul.f32 %v1368_v13, %v1789_v30 }
 0x1a1   : > { %v1370_v18 = vpop.eup %1369 }
 0x1a2   : > { %v1372_v19 = vpop.eup %1371  ;;  %v990_v29 = vmul.f32 %v1370_v18, %v1795_v42  ;;  %v1000_v42 = vpack.c.bf16 %v987_v51, %v983_v37 }
 0x1a3   : > { %v1374_v24 = vpop.eup %1373 }
 0x1a4   : > { %v991_v16 = vmul.f32 %v1374_v24, %v1801_v61 }
 0x1a5   : > { %v1376_v21 = vpop.eup %1375 }
 0x1a6   : > { %v1378_v25 = vpop.eup %1377  ;;  %v994_v32 = vmul.f32 %v1376_v21, %v1810_v14  ;;  %v989_v14 = vmul.f32 %v1372_v19, %v1798_v44 }
 0x1a7   : > { %v1380_v45 = vpop.eup %1379  ;;  %v993_v30 = vmul.f32 %v1378_v25, %v1813_v3  ;;  %v999_v3 = vpack.c.bf16 %v986_v52, %v982_v38 }
 0x1a8   : > { %v1382_v46 = vpop.eup %1381  ;;  %v995_v17 = vmul.f32 %v1380_v45, %v1817_v23  ;;  %v1003_v56 = vpack.c.bf16 %v994_v32, %v990_v29 }
 0x1a9   : > { %v1384_v20 = vpop.eup %1383  ;;  %v996_v49 = vmul.f32 %v1382_v46, %v1821_v28 }
 0x1aa   : > { %v1386_v15 = vpop.eup %1385  ;;  %v1004_v35 = vpack.c.bf16 %v995_v17, %v991_v16  ;;  %v992_v23 = vmul.f32 %v1384_v20, %v1804_v11 }
 0x1ab   : > { %v1388_v55 = vpop.eup %1387  ;;  %v997_v61 = vmul.f32 %v1386_v15, %v1827_v50  ;;  %v1002_v50 = vpack.c.bf16 %v989_v14, %v985_v5 }
 0x1ac   : > { %1029 = vmatprep.subr.bf16.mxu0 %v1004_v35  ;;  %v1390_v22 = vpop.eup %1389  ;;  %v988_v36 = vmul.f32 %v1388_v55, %v1792_v33  ;;  %v1005_v44 = vpack.c.bf16 %v996_v49, %v992_v23  ;;  %v1011_v33 = vpop.permute.xlu1 %1010 }
 0x1ad   : > { %1030 = vmatpush1.bf16.msra.mxu0 %v1003_v56  ;;  %v1006_v28 = vpack.c.bf16 %v997_v61, %v993_v30  ;;  %v984_v11 = vmul.f32 %v1390_v22, %v1806_v12 }
 0x1ae   : > { %1031 = vmatprep.subr.bf16.mxu0 %v1000_v42 }
 0x1af   : > { %1070 = vmatprep.subr.bf16.mxu1 %v1006_v28  ;;  %v1001_v8 = vpack.c.bf16 %v988_v36, %v984_v11 }
 0x1b0   : > { %1071 = vmatpush1.bf16.msra.mxu1 %v1005_v44 }
 0x1b1   : > { %1032 = vmatpush1.bf16.msra.mxu0 %v999_v3  ;;  %1072 = vmatprep.subr.bf16.mxu1 %v1002_v50 }
 0x1b4   : > { %1214 = vmatmul.mubr.msk.bf16.vlgmr.msra.gmra.mxu0 %vm1013_vm10, %v998_v63  ;;  %1073 = vmatpush1.bf16.msra.mxu1 %v1001_v8 }
 0x1b7   : > { %1215 = vmatmul.mubr.msk.bf16.vlgmr.msra.gmra.mxu1 %vm1013_vm10, %v998_v63 }
 0x274   : > { %v1051_v12 = vpop.f32.mrf.mxu0 }
 0x275   : > { %v1052_v26 = vadd.f32 %v1051_v12, %v1011_v33 }
 0x276   : > { %v1053_v39 = vpop.f32.mrf.mxu0 }
 0x277   : > { %1099 = vst [vmem:[%s256_s19] sm:$0xff] %v1052_v26  ;;  %1216 = vst [vmem:[%s256_s19 + $0x20] sm:$0xff] %v1052_v26  ;;  %v1054_v40 = vadd.f32 %v1053_v39, %v1011_v33  ;;  %v1092_v57 = vpop.f32.mrf.mxu1 }
 0x278   : > { %v1093_v58 = vadd.f32 %v1092_v57, %v1011_v33  ;;  %v1055_v53 = vpop.f32.mrf.mxu0 }
 0x279   : > { %1100 = vst [vmem:[%s256_s19 + $0x8] sm:$0xff] %v1054_v40  ;;  %1217 = vst [vmem:[%s256_s19 + $0x28] sm:$0xff] %v1054_v40  ;;  %v1094_v0 = vpop.f32.mrf.mxu1 }
 0x27a   : > { %1218 = vst [vmem:[%s256_s19 + $0x10] sm:$0xff] %v1093_v58  ;;  %1220 = vst [vmem:[%s256_s19 + $0x30] sm:$0xff] %v1093_v58  ;;  %v1095_v1 = vadd.f32 %v1094_v0, %v1011_v33  ;;  %v1056_v54 = vpop.f32.mrf.mxu0 }
 0x27b   : > { %v1096_v2 = vpop.f32.mrf.mxu1 }
 0x27c   : > { %1219 = vst [vmem:[%s256_s19 + $0x18] sm:$0xff] %v1095_v1  ;;  %1221 = vst [vmem:[%s256_s19 + $0x38] sm:$0xff] %v1095_v1 }
 0x27d   : > { %v1097_v4 = vpop.f32.mrf.mxu1 }
 0x27e PF: > { %s16_s21 = sadd.s32 1, %s1397_s21  }
 0x27f   : > { %p13_p5 = scmp.ge.s32.totalorder %s16_s21, 4  }
 0x281   :  { %15 = sbr.rel (!%p13_p5) target bundleno = 1 (0x1), region = 85 }

</bundles_post_ra>
